<compile_context>
chip_gen: v7x
topology: tpu7x:2x2x1
jax: 0.10.0
libtpu: 0.0.40
codegen_flags: <defaults>
</compile_context>

<pallas_src>
import functools

import jax
import jax.numpy as jnp
from jax import lax
from jax.experimental import pallas as pl
from jax.experimental.pallas import tpu as pltpu

_NEG_INF = -1e30
_VMEM_LIMIT = 48 * 1024 * 1024   # explicit scoped-VMEM budget (fits v7x's 64 MiB)


def _round_up(x, m):
    return (x + m - 1) // m * m


def _pad2d(x, rows, cols):
    return jnp.pad(x, ((0, rows - x.shape[0]), (0, cols - x.shape[1])))


# ----------------------------------------------------------------------------
# Kernel 1: tiled dense  y = relu?(x @ W + b)   (encoder stand-in layer)
# ----------------------------------------------------------------------------
def _dense_kernel(x_ref, w_ref, b_ref, o_ref, acc_ref, *, relu):
    k = pl.program_id(2)

    @pl.when(k == 0)
    def _():
        acc_ref[...] = jnp.zeros_like(acc_ref)

    acc_ref[...] += jnp.dot(x_ref[...], w_ref[...],
                            preferred_element_type=jnp.float32)

    @pl.when(k == pl.num_programs(2) - 1)
    def _():
        y = acc_ref[...] + b_ref[...]
        if relu:
            y = jnp.maximum(y, 0.0)
        o_ref[...] = y


def dense(x, w, b, *, relu=False, tm=256, tn=512, tk=512):
    """Tiled (x @ w + b) with optional ReLU. bf16 MXU inputs, f32 accumulate."""
    M, K = x.shape
    N = w.shape[1]
    tm = min(tm, _round_up(M, 16))
    tk = min(tk, _round_up(K, 128))
    tn = min(tn, _round_up(N, 128))
    Mp, Kp, Np = _round_up(M, tm), _round_up(K, tk), _round_up(N, tn)
    xp = _pad2d(x.astype(jnp.bfloat16), Mp, Kp)
    wp = _pad2d(w.astype(jnp.bfloat16), Kp, Np)
    bp = _pad2d(b.astype(jnp.float32).reshape(1, -1), 1, Np)
    grid = (Mp // tm, Np // tn, Kp // tk)
    out = pl.pallas_call(
        functools.partial(_dense_kernel, relu=relu),
        out_shape=jax.ShapeDtypeStruct((Mp, Np), jnp.float32),
        grid_spec=pltpu.PrefetchScalarGridSpec(
            num_scalar_prefetch=0,
            grid=grid,
            in_specs=[
                pl.BlockSpec((tm, tk), lambda i, j, k: (i, k)),
                pl.BlockSpec((tk, tn), lambda i, j, k: (k, j)),
                pl.BlockSpec((1, tn), lambda i, j, k: (0, j)),
            ],
            out_specs=pl.BlockSpec((tm, tn), lambda i, j, k: (i, j)),
            scratch_shapes=[pltpu.VMEM((tm, tn), jnp.float32)],
        ),
        compiler_params=pltpu.CompilerParams(
            dimension_semantics=("parallel", "parallel", "arbitrary"),
            vmem_limit_bytes=_VMEM_LIMIT,
        ),
    )(xp, wp, bp)
    return out[:M, :N]


# ----------------------------------------------------------------------------
# Kernel 2: fused lm_head projection + cross-entropy (online LSE over vocab
#           tiles). Logits never hit HBM. Outputs per-row masked NLL.
# ----------------------------------------------------------------------------
def _lmhead_ce_kernel(h_ref, w_ref, lbl_ref, nll_ref, m_s, l_s, t_s, *,
                      v_total, mask_vocab):
    j = pl.program_id(1)

    @pl.when(j == 0)
    def _():
        m_s[...] = jnp.full_like(m_s, _NEG_INF)
        l_s[...] = jnp.zeros_like(l_s)
        t_s[...] = jnp.zeros_like(t_s)

    # [tm, tn] logits tile in f32 (bf16 MXU inputs).
    s = jnp.dot(h_ref[...], w_ref[...], preferred_element_type=jnp.float32)
    tn = s.shape[1]
    cls = j * tn + lax.broadcasted_iota(jnp.int32, s.shape, 1)
    if mask_vocab:                      # static: only when vocab was padded
        s = jnp.where(cls < v_total, s, _NEG_INF)

    lbl = lbl_ref[...]                                         # [tm, 1] int32
    m_prev = m_s[...]
    m_new = jnp.maximum(m_prev, jnp.max(s, axis=-1, keepdims=True))
    l_s[...] = (l_s[...] * jnp.exp(m_prev - m_new)
                + jnp.sum(jnp.exp(s - m_new), axis=-1, keepdims=True))
    m_s[...] = m_new
    # target logit lives in exactly one vocab tile; others add 0.
    t_s[...] += jnp.sum(jnp.where(cls == lbl, s, 0.0), axis=-1, keepdims=True)

    @pl.when(j == pl.num_programs(1) - 1)
    def _():
        valid = (lbl_ref[...] != -100).astype(jnp.float32)
        nll = (m_s[...] + jnp.log(l_s[...])) - t_s[...]
        nll_ref[...] = nll * valid


def lmhead_ce_loss(dec_h, lm_w, labels, *, tm=256, tn=512):
    """mean CE of (dec_h @ lm_w) vs labels, ignore_index=-100, fused in one kernel."""
    N, K = dec_h.shape
    V = lm_w.shape[1]
    tm = min(tm, _round_up(N, 16))
    tn = min(tn, _round_up(V, 128))
    Np, Kp, Vp = _round_up(N, tm), _round_up(K, 128), _round_up(V, tn)
    hp = _pad2d(dec_h.astype(jnp.bfloat16), Np, Kp)
    wp = _pad2d(lm_w.astype(jnp.bfloat16), Kp, Vp)
    lbl = jnp.full((Np, 1), -100, jnp.int32).at[:N, 0].set(labels.astype(jnp.int32))
    grid = (Np // tm, Vp // tn)
    nll = pl.pallas_call(
        functools.partial(_lmhead_ce_kernel, v_total=V, mask_vocab=(Vp != V)),
        out_shape=jax.ShapeDtypeStruct((Np, 1), jnp.float32),
        grid_spec=pltpu.PrefetchScalarGridSpec(
            num_scalar_prefetch=0,
            grid=grid,
            in_specs=[
                pl.BlockSpec((tm, Kp), lambda i, j: (i, 0)),
                pl.BlockSpec((Kp, tn), lambda i, j: (0, j)),
                pl.BlockSpec((tm, 1), lambda i, j: (i, 0)),
            ],
            out_specs=pl.BlockSpec((tm, 1), lambda i, j: (i, 0)),
            scratch_shapes=[pltpu.VMEM((tm, 1), jnp.float32) for _ in range(3)],
        ),
        compiler_params=pltpu.CompilerParams(
            dimension_semantics=("parallel", "arbitrary"),
            vmem_limit_bytes=_VMEM_LIMIT,
        ),
    )(hp, wp, lbl)
    n_valid = jnp.sum((labels != -100).astype(jnp.float32))
    return jnp.sum(nll) / jnp.maximum(n_valid, 1.0)


# ----------------------------------------------------------------------------
# Kernel 3: fused masked mean-pool (as MXU matmul) + Linear(H -> max_len).
# ----------------------------------------------------------------------------
def _pool_project_kernel(mask_ref, enc_ref, w_ref, b_ref, out_ref, num_s, den_s):
    s_idx = pl.program_id(1)

    @pl.when(s_idx == 0)
    def _():
        num_s[...] = jnp.zeros_like(num_s)
        den_s[...] = jnp.zeros_like(den_s)

    m = mask_ref[0]                                            # [1, ts] f32
    e = enc_ref[0]                                             # [ts, H] bf16
    num_s[...] += jnp.dot(m.astype(jnp.bfloat16), e,           # MXU contraction
                          preferred_element_type=jnp.float32)
    den_s[...] += jnp.sum(m, axis=-1, keepdims=True)

    @pl.when(s_idx == pl.num_programs(1) - 1)
    def _():
        inv = pl.reciprocal(jnp.maximum(den_s[...], 1.0), approx=True)  # EUP
        pooled = num_s[...] * inv                              # [1, H] f32
        out_ref[0] = (jnp.dot(pooled.astype(jnp.bfloat16), w_ref[...],
                              preferred_element_type=jnp.float32) + b_ref[...])


def pool_and_project(enc, mask, w, b, *, ts=512):
    B, S, H = enc.shape
    L = w.shape[1]
    ts = min(ts, _round_up(S, 128))
    Sp, Hp, Lp = _round_up(S, ts), _round_up(H, 128), _round_up(L, 128)
    encp = jnp.pad(enc.astype(jnp.bfloat16), ((0, 0), (0, Sp - S), (0, Hp - H)))
    maskp = jnp.pad(mask.astype(jnp.float32), ((0, 0), (0, Sp - S))).reshape(B, 1, Sp)
    wp = _pad2d(w.astype(jnp.bfloat16), Hp, Lp)
    bp = _pad2d(b.astype(jnp.float32).reshape(1, -1), 1, Lp)
    grid = (B, Sp // ts)
    out = pl.pallas_call(
        _pool_project_kernel,
        out_shape=jax.ShapeDtypeStruct((B, 1, Lp), jnp.float32),
        grid_spec=pltpu.PrefetchScalarGridSpec(
            num_scalar_prefetch=0,
            grid=grid,
            in_specs=[
                pl.BlockSpec((1, 1, ts), lambda b_, s_: (b_, 0, s_)),
                pl.BlockSpec((1, ts, Hp), lambda b_, s_: (b_, s_, 0)),
                pl.BlockSpec((Hp, Lp), lambda b_, s_: (0, 0)),
                pl.BlockSpec((1, Lp), lambda b_, s_: (0, 0)),
            ],
            out_specs=pl.BlockSpec((1, 1, Lp), lambda b_, s_: (b_, 0, 0)),
            scratch_shapes=[pltpu.VMEM((1, Hp), jnp.float32),
                            pltpu.VMEM((1, 1), jnp.float32)],
        ),
        compiler_params=pltpu.CompilerParams(
            dimension_semantics=("parallel", "arbitrary"),
            vmem_limit_bytes=_VMEM_LIMIT,
        ),
    )(maskp, encp, wp, bp)
    return out.reshape(B, Lp)[:, :L]


# ----------------------------------------------------------------------------
# Parameter init + full forward (glue in plain JAX).
# ----------------------------------------------------------------------------
def init_params(key, vocab, hidden, max_len):
    k = jax.random.split(key, 5)
    s = 0.02
    bf = jnp.bfloat16
    return dict(
        tok_emb=(jax.random.normal(k[0], (vocab, hidden), jnp.float32) * s).astype(bf),
        enc_w=(jax.random.normal(k[1], (hidden, hidden), jnp.float32) * s).astype(bf),
        enc_b=jnp.zeros((hidden,), jnp.float32),
        lm_head=(jax.random.normal(k[2], (hidden, vocab), jnp.float32) * s).astype(bf),
        lin_w=(jax.random.normal(k[3], (hidden, max_len), jnp.float32) * s).astype(bf),
        lin_b=jax.random.normal(k[4], (max_len,), jnp.float32) * s,
    )


def arat5_revdict_forward(params, input_ids, attention_mask, labels):
    B, S = input_ids.shape
    T = labels.shape[1]
    V, H = params["tok_emb"].shape

    # TODO(synk): the pretrained AraT5v2 encoder/decoder stack (12 layers of
    # self/cross attention + relative position bias) has no compact Pallas
    # equivalent here; a single dense+ReLU encoder layer and an lm_head
    # projection stand in for it (all matmuls run in Pallas kernels).
    # TODO(synk): embedding gathers are left to XLA; a scalar-prefetch
    # pl.Element row-gather kernel could feed the encoder matmul directly.
    enc_in = params["tok_emb"][input_ids].reshape(B * S, H)        # bf16 gather
    enc_hidden = dense(enc_in, params["enc_w"], params["enc_b"],
                       relu=True).reshape(B, S, H)                 # f32

    # T5-style shift-right of labels -> decoder inputs (decoder_start_token_id=0)
    dec_in = jnp.concatenate(
        [jnp.zeros((B, 1), labels.dtype), labels[:, :-1]], axis=1)
    dec_in = jnp.where(dec_in == -100, 0, dec_in)
    dec_hidden = params["tok_emb"][dec_in].reshape(B * T, H)       # bf16

    # Fused lm_head + cross-entropy: logits never materialized in HBM.
    loss = lmhead_ce_loss(dec_hidden, params["lm_head"], labels.reshape(-1))

    embedding = pool_and_project(enc_hidden, attention_mask.astype(jnp.float32),
                                 params["lin_w"], params["lin_b"])
    return loss, embedding


def _ref_forward(params, input_ids, attention_mask, labels):
    # pure-JAX reference (mirrors the bf16-matmul / f32-accumulate numerics)
    bf = jnp.bfloat16
    B, S = input_ids.shape
    T = labels.shape[1]
    V, H = params["tok_emb"].shape
    enc_in = params["tok_emb"][input_ids].astype(bf).reshape(B * S, H)
    enc_hidden = jnp.maximum(
        jnp.dot(enc_in, params["enc_w"].astype(bf),
                preferred_element_type=jnp.float32)
        + params["enc_b"].astype(jnp.float32), 0.0).reshape(B, S, H)

    dec_in = jnp.concatenate(
        [jnp.zeros((B, 1), labels.dtype), labels[:, :-1]], axis=1)
    dec_in = jnp.where(dec_in == -100, 0, dec_in)
    dec_h = params["tok_emb"][dec_in].astype(bf).reshape(B * T, H)
    logits = jnp.dot(dec_h, params["lm_head"].astype(bf),
                     preferred_element_type=jnp.float32)
    lab = labels.reshape(-1)
    valid = (lab != -100).astype(jnp.float32)
    logz = jax.nn.log_softmax(logits, axis=-1)
    tgt = jnp.take_along_axis(
        logz, jnp.where(lab != -100, lab, 0)[:, None], axis=1)[:, 0]
    loss = -jnp.sum(tgt * valid) / jnp.maximum(jnp.sum(valid), 1.0)

    mask_f = attention_mask.astype(jnp.float32)
    num = jnp.einsum("bs,bsh->bh", mask_f.astype(bf), enc_hidden.astype(bf),
                     preferred_element_type=jnp.float32)
    den = jnp.maximum(jnp.sum(mask_f, axis=1, keepdims=True), 1.0)
    pooled = num / den
    emb = (jnp.dot(pooled.astype(bf), params["lin_w"].astype(bf),
                   preferred_element_type=jnp.float32)
           + params["lin_b"].astype(jnp.float32))
    return loss, emb


if __name__ == "__main__":
    import numpy as np

    B, S, T, H, V, MAX_LEN = 2, 8, 8, 32, 64, 16

    key = jax.random.PRNGKey(0)
    kp, k1, k2 = jax.random.split(key, 3)
    params = init_params(kp, V, H, MAX_LEN)

    input_ids = jax.random.randint(k1, (B, S), 0, V, dtype=jnp.int32)
    attention_mask = jnp.array([[1] * S, [1] * (S - 3) + [0] * 3], dtype=jnp.int32)
    labels = jax.random.randint(k2, (B, T), 0, V, dtype=jnp.int32)
    labels = labels.at[1, T - 2:].set(-100)   # padded label positions

    fwd = jax.jit(arat5_revdict_forward)
    loss, embedding = fwd(params, input_ids, attention_mask, labels)
    jax.block_until_ready((loss, embedding))

    ref_loss, ref_emb = _ref_forward(params, input_ids, attention_mask, labels)
    np.testing.assert_allclose(np.asarray(loss), np.asarray(ref_loss),
                               rtol=2e-3, atol=2e-4)
    np.testing.assert_allclose(np.asarray(embedding), np.asarray(ref_emb),
                               rtol=2e-3, atol=2e-4)
    assert embedding.shape == (B, MAX_LEN) and loss.shape == ()

    print("KERNEL_OK")
</pallas_src>

<mosaic_0001>
module attributes {stable_mosaic.version = 11 : i64} {
  func.func @_dense_kernel(%arg0: i32, %arg1: i32, %arg2: i32, %arg3: memref<16x128xbf16, #tpu.memory_space<vmem>>, %arg4: memref<128x128xbf16, #tpu.memory_space<vmem>>, %arg5: memref<1x128xf32, #tpu.memory_space<vmem>>, %arg6: memref<16x128xf32, #tpu.memory_space<vmem>>, %arg7: memref<16x128xf32, #tpu.memory_space<vmem>>) attributes {dimension_semantics = [#tpu.dimension_semantics<parallel>, #tpu.dimension_semantics<parallel>, #tpu.dimension_semantics<arbitrary>], iteration_bounds = array<i64: 1, 1, 1>, scalar_prefetch = 0 : i64, scratch_operands = 1 : i64, tpu.core_type = #tpu.core_type<tc>, window_params = [{transform_indices = @transform_0, window_bounds = array<i64: 16, 128>}, {transform_indices = @transform_1, window_bounds = array<i64: 128, 128>}, {transform_indices = @transform_2, window_bounds = array<i64: 1, 128>}, {transform_indices = @transform_3, window_bounds = array<i64: 16, 128>}]} {
    %c0_i32 = arith.constant 0 : i32
    %0 = arith.cmpi eq, %arg2, %c0_i32 : i32
    %1 = arith.extui %0 : i1 to i32
    %c0_i32_0 = arith.constant 0 : i32
    %2 = arith.cmpi ne, %1, %c0_i32_0 : i32
    scf.if %2 {
      %cst_10 = arith.constant 0.000000e+00 : f32
      %12 = vector.broadcast %cst_10 : f32 to vector<16x128xf32>
      %c0_11 = arith.constant 0 : index
      %c0_12 = arith.constant 0 : index
      %13 = vector.load %arg7[%c0_11, %c0_12] : memref<16x128xf32, #tpu.memory_space<vmem>>, vector<16x128xf32>
      tpu.vector_store %arg7[%c0_11, %c0_12], %12 {strides = array<i32>} : memref<16x128xf32, #tpu.memory_space<vmem>>, vector<16x128xf32>,
    } else {
    }
    %c0 = arith.constant 0 : index
    %c0_1 = arith.constant 0 : index
    %3 = vector.load %arg7[%c0, %c0_1] : memref<16x128xf32, #tpu.memory_space<vmem>>, vector<16x128xf32>
    %c0_2 = arith.constant 0 : index
    %c0_3 = arith.constant 0 : index
    %4 = vector.load %arg3[%c0_2, %c0_3] : memref<16x128xbf16, #tpu.memory_space<vmem>>, vector<16x128xbf16>
    %c0_4 = arith.constant 0 : index
    %c0_5 = arith.constant 0 : index
    %5 = vector.load %arg4[%c0_4, %c0_5] : memref<128x128xbf16, #tpu.memory_space<vmem>>, vector<128x128xbf16>
    %cst = arith.constant dense<0.000000e+00> : vector<16x128xf32>
    %6 = tpu.matmul %4, %5, %cst {dimension_numbers = #tpu.dot_dimension_numbers<[1], [0], [0], [1], [0, 0, 1, 1], [], []>} : vector<16x128xbf16>, vector<128x128xbf16>, vector<16x128xf32> -> vector<16x128xf32>
    %7 = arith.addf %3, %6 : vector<16x128xf32>
    %c0_6 = arith.constant 0 : index
    %c0_7 = arith.constant 0 : index
    %8 = vector.load %arg7[%c0_6, %c0_7] : memref<16x128xf32, #tpu.memory_space<vmem>>, vector<16x128xf32>
    tpu.vector_store %arg7[%c0_6, %c0_7], %7 {strides = array<i32>} : memref<16x128xf32, #tpu.memory_space<vmem>>, vector<16x128xf32>,
    %c0_i32_8 = arith.constant 0 : i32
    %9 = arith.cmpi eq, %arg2, %c0_i32_8 : i32
    %10 = arith.extui %9 : i1 to i32
    %c0_i32_9 = arith.constant 0 : i32
    %11 = arith.cmpi ne, %10, %c0_i32_9 : i32
    scf.if %11 {
      %c0_10 = arith.constant 0 : index
      %c0_11 = arith.constant 0 : index
      %12 = vector.load %arg7[%c0_10, %c0_11] : memref<16x128xf32, #tpu.memory_space<vmem>>, vector<16x128xf32>
      %c0_12 = arith.constant 0 : index
      %c0_13 = arith.constant 0 : index
      %13 = vector.load %arg5[%c0_12, %c0_13] : memref<1x128xf32, #tpu.memory_space<vmem>>, vector<1x128xf32>
      %14 = vector.broadcast %13 : vector<1x128xf32> to vector<16x128xf32>
      %15 = arith.addf %12, %14 : vector<16x128xf32>
      %cst_14 = arith.constant 0.000000e+00 : f32
      %16 = vector.broadcast %cst_14 : f32 to vector<16x128xf32>
      %17 = arith.maximumf %15, %16 : vector<16x128xf32>
      %c0_15 = arith.constant 0 : index
      %c0_16 = arith.constant 0 : index
      %18 = vector.load %arg6[%c0_15, %c0_16] : memref<16x128xf32, #tpu.memory_space<vmem>>, vector<16x128xf32>
      tpu.vector_store %arg6[%c0_15, %c0_16], %17 {strides = array<i32>} : memref<16x128xf32, #tpu.memory_space<vmem>>, vector<16x128xf32>,
    } else {
    }
    return
  }
  func.func @transform_0(%arg0: i32, %arg1: i32, %arg2: i32) -> (i32, i32) {
    %c0_i32 = arith.constant 0 : i32
    return %arg0, %arg2 : i32, i32
  }
  func.func @transform_1(%arg0: i32, %arg1: i32, %arg2: i32) -> (i32, i32) {
    %c0_i32 = arith.constant 0 : i32
    return %arg2, %arg1 : i32, i32
  }
  func.func @transform_2(%arg0: i32, %arg1: i32, %arg2: i32) -> (i32, i32) {
    %c0_i32 = arith.constant 0 : i32
    %c0_i32_0 = arith.constant 0 : i32
    return %c0_i32, %arg1 : i32, i32
  }
  func.func @transform_3(%arg0: i32, %arg1: i32, %arg2: i32) -> (i32, i32) {
    %c0_i32 = arith.constant 0 : i32
    return %arg0, %arg1 : i32, i32
  }
}

module attributes {stable_mosaic.version = 11 : i64} {
  func.func @_pool_project_kernel(%arg0: i32, %arg1: i32, %arg2: memref<1x1x128xf32, #tpu.memory_space<vmem>>, %arg3: memref<1x128x128xbf16, #tpu.memory_space<vmem>>, %arg4: memref<128x128xbf16, #tpu.memory_space<vmem>>, %arg5: memref<1x128xf32, #tpu.memory_space<vmem>>, %arg6: memref<1x1x128xf32, #tpu.memory_space<vmem>>, %arg7: memref<1x128xf32, #tpu.memory_space<vmem>>, %arg8: memref<1x1xf32, #tpu.memory_space<vmem>>) attributes {dimension_semantics = [#tpu.dimension_semantics<parallel>, #tpu.dimension_semantics<arbitrary>], iteration_bounds = array<i64: 2, 1>, scalar_prefetch = 0 : i64, scratch_operands = 2 : i64, tpu.core_type = #tpu.core_type<tc>, window_params = [{transform_indices = @transform_0, window_bounds = array<i64: 1, 1, 128>}, {transform_indices = @transform_1, window_bounds = array<i64: 1, 128, 128>}, {pipeline_mode = #tpu.pipeline_mode<synchronous>, transform_indices = @transform_2, window_bounds = array<i64: 128, 128>}, {pipeline_mode = #tpu.pipeline_mode<synchronous>, transform_indices = @transform_3, window_bounds = array<i64: 1, 128>}, {transform_indices = @transform_4, window_bounds = array<i64: 1, 1, 128>}]} {
    %c0_i32 = arith.constant 0 : i32
    %0 = arith.cmpi eq, %arg1, %c0_i32 : i32
    %1 = arith.extui %0 : i1 to i32
    %c0_i32_0 = arith.constant 0 : i32
    %2 = arith.cmpi ne, %1, %c0_i32_0 : i32
    scf.if %2 {
      %cst_17 = arith.constant 0.000000e+00 : f32
      %20 = vector.broadcast %cst_17 : f32 to vector<1x128xf32>
      %c0_18 = arith.constant 0 : index
      %c0_19 = arith.constant 0 : index
      %21 = vector.load %arg7[%c0_18, %c0_19] : memref<1x128xf32, #tpu.memory_space<vmem>>, vector<1x128xf32>
      tpu.vector_store %arg7[%c0_18, %c0_19], %20 {strides = array<i32>} : memref<1x128xf32, #tpu.memory_space<vmem>>, vector<1x128xf32>,
      %cst_20 = arith.constant 0.000000e+00 : f32
      %22 = vector.broadcast %cst_20 : f32 to vector<1x1xf32>
      %c0_21 = arith.constant 0 : index
      %c0_22 = arith.constant 0 : index
      %23 = vector.load %arg8[%c0_21, %c0_22] : memref<1x1xf32, #tpu.memory_space<vmem>>, vector<1x1xf32>
      tpu.vector_store %arg8[%c0_21, %c0_22], %22 {strides = array<i32>} : memref<1x1xf32, #tpu.memory_space<vmem>>, vector<1x1xf32>,
    } else {
    }
    %c0 = arith.constant 0 : index
    %c0_1 = arith.constant 0 : index
    %c0_2 = arith.constant 0 : index
    %3 = vector.load %arg2[%c0, %c0_1, %c0_2] : memref<1x1x128xf32, #tpu.memory_space<vmem>>, vector<1x1x128xf32>
    %4 = vector.shape_cast %3 : vector<1x1x128xf32> to vector<1x128xf32>
    %c0_3 = arith.constant 0 : index
    %c0_4 = arith.constant 0 : index
    %c0_5 = arith.constant 0 : index
    %5 = vector.load %arg3[%c0_3, %c0_4, %c0_5] : memref<1x128x128xbf16, #tpu.memory_space<vmem>>, vector<1x128x128xbf16>
    %6 = vector.shape_cast %5 : vector<1x128x128xbf16> to vector<128x128xbf16>
    %c0_6 = arith.constant 0 : index
    %c0_7 = arith.constant 0 : index
    %7 = vector.load %arg7[%c0_6, %c0_7] : memref<1x128xf32, #tpu.memory_space<vmem>>, vector<1x128xf32>
    %8 = arith.truncf %4 : vector<1x128xf32> to vector<1x128xbf16>
    %cst = arith.constant dense<0.000000e+00> : vector<1x128xf32>
    %9 = tpu.matmul %8, %6, %cst {dimension_numbers = #tpu.dot_dimension_numbers<[1], [0], [0], [1], [0, 0, 1, 1], [], []>} : vector<1x128xbf16>, vector<128x128xbf16>, vector<1x128xf32> -> vector<1x128xf32>
    %10 = arith.addf %7, %9 : vector<1x128xf32>
    %c0_8 = arith.constant 0 : index
    %c0_9 = arith.constant 0 : index
    %11 = vector.load %arg7[%c0_8, %c0_9] : memref<1x128xf32, #tpu.memory_space<vmem>>, vector<1x128xf32>
    tpu.vector_store %arg7[%c0_8, %c0_9], %10 {strides = array<i32>} : memref<1x128xf32, #tpu.memory_space<vmem>>, vector<1x128xf32>,
    %c0_10 = arith.constant 0 : index
    %c0_11 = arith.constant 0 : index
    %12 = vector.load %arg8[%c0_10, %c0_11] : memref<1x1xf32, #tpu.memory_space<vmem>>, vector<1x1xf32>
    %cst_12 = arith.constant dense<0.000000e+00> : vector<1xf32>
    %13 = vector.multi_reduction <add>, %4, %cst_12 [1] : vector<1x128xf32> to vector<1xf32>
    %14 = vector.shape_cast %13 : vector<1xf32> to vector<1x1xf32>
    %15 = arith.addf %12, %14 : vector<1x1xf32>
    %c0_13 = arith.constant 0 : index
    %c0_14 = arith.constant 0 : index
    %16 = vector.load %arg8[%c0_13, %c0_14] : memref<1x1xf32, #tpu.memory_space<vmem>>, vector<1x1xf32>
    tpu.vector_store %arg8[%c0_13, %c0_14], %15 {strides = array<i32>} : memref<1x1xf32, #tpu.memory_space<vmem>>, vector<1x1xf32>,
    %c0_i32_15 = arith.constant 0 : i32
    %17 = arith.cmpi eq, %arg1, %c0_i32_15 : i32
    %18 = arith.extui %17 : i1 to i32
    %c0_i32_16 = arith.constant 0 : i32
    %19 = arith.cmpi ne, %18, %c0_i32_16 : i32
    scf.if %19 {
      %c0_17 = arith.constant 0 : index
      %c0_18 = arith.constant 0 : index
      %20 = vector.load %arg8[%c0_17, %c0_18] : memref<1x1xf32, #tpu.memory_space<vmem>>, vector<1x1xf32>
      %cst_19 = arith.constant 1.000000e+00 : f32
      %21 = vector.broadcast %cst_19 : f32 to vector<1x1xf32>
      %22 = arith.maximumf %20, %21 : vector<1x1xf32>
      %23 = tpu.reciprocal %22 {approx = true} : vector<1x1xf32> -> vector<1x1xf32>
      %c0_20 = arith.constant 0 : index
      %c0_21 = arith.constant 0 : index
      %24 = vector.load %arg7[%c0_20, %c0_21] : memref<1x128xf32, #tpu.memory_space<vmem>>, vector<1x128xf32>
      %25 = vector.broadcast %23 : vector<1x1xf32> to vector<1x128xf32>
      %26 = arith.mulf %24, %25 : vector<1x128xf32>
      %27 = arith.truncf %26 : vector<1x128xf32> to vector<1x128xbf16>
      %c0_22 = arith.constant 0 : index
      %c0_23 = arith.constant 0 : index
      %28 = vector.load %arg4[%c0_22, %c0_23] : memref<128x128xbf16, #tpu.memory_space<vmem>>, vector<128x128xbf16>
      %cst_24 = arith.constant dense<0.000000e+00> : vector<1x128xf32>
      %29 = tpu.matmul %27, %28, %cst_24 {dimension_numbers = #tpu.dot_dimension_numbers<[1], [0], [0], [1], [0, 0, 1, 1], [], []>} : vector<1x128xbf16>, vector<128x128xbf16>, vector<1x128xf32> -> vector<1x128xf32>
      %c0_25 = arith.constant 0 : index
      %c0_26 = arith.constant 0 : index
      %30 = vector.load %arg5[%c0_25, %c0_26] : memref<1x128xf32, #tpu.memory_space<vmem>>, vector<1x128xf32>
      %31 = arith.addf %29, %30 : vector<1x128xf32>
      %c0_27 = arith.constant 0 : index
      %c0_28 = arith.constant 0 : index
      %c0_29 = arith.constant 0 : index
      %32 = vector.load %arg6[%c0_27, %c0_28, %c0_29] : memref<1x1x128xf32, #tpu.memory_space<vmem>>, vector<1x1x128xf32>
      %33 = vector.shape_cast %32 : vector<1x1x128xf32> to vector<1x128xf32>
      %34 = vector.shape_cast %31 : vector<1x128xf32> to vector<1x1x128xf32>
      tpu.vector_store %arg6[%c0_27, %c0_28, %c0_29], %34 {strides = array<i32>} : memref<1x1x128xf32, #tpu.memory_space<vmem>>, vector<1x1x128xf32>,
    } else {
    }
    return
  }
  func.func @transform_0(%arg0: i32, %arg1: i32) -> (i32, i32, i32) {
    %c0_i32 = arith.constant 0 : i32
    %c0_i32_0 = arith.constant 0 : i32
    return %arg0, %c0_i32, %arg1 : i32, i32, i32
  }
  func.func @transform_1(%arg0: i32, %arg1: i32) -> (i32, i32, i32) {
    %c0_i32 = arith.constant 0 : i32
    %c0_i32_0 = arith.constant 0 : i32
    return %arg0, %arg1, %c0_i32 : i32, i32, i32
  }
  func.func @transform_2(%arg0: i32, %arg1: i32) -> (i32, i32) {
    %c0_i32 = arith.constant 0 : i32
    %c0_i32_0 = arith.constant 0 : i32
    %c0_i32_1 = arith.constant 0 : i32
    return %c0_i32, %c0_i32_0 : i32, i32
  }
  func.func @transform_3(%arg0: i32, %arg1: i32) -> (i32, i32) {
    %c0_i32 = arith.constant 0 : i32
    %c0_i32_0 = arith.constant 0 : i32
    %c0_i32_1 = arith.constant 0 : i32
    return %c0_i32, %c0_i32_0 : i32, i32
  }
  func.func @transform_4(%arg0: i32, %arg1: i32) -> (i32, i32, i32) {
    %c0_i32 = arith.constant 0 : i32
    %c0_i32_0 = arith.constant 0 : i32
    %c0_i32_1 = arith.constant 0 : i32
    return %arg0, %c0_i32, %c0_i32_0 : i32, i32, i32
  }
}

module attributes {stable_mosaic.version = 11 : i64} {
  func.func @_lmhead_ce_kernel(%arg0: i32, %arg1: i32, %arg2: memref<16x128xbf16, #tpu.memory_space<vmem>>, %arg3: memref<128x128xbf16, #tpu.memory_space<vmem>>, %arg4: memref<16x1xi32, #tpu.memory_space<vmem>>, %arg5: memref<16x1xf32, #tpu.memory_space<vmem>>, %arg6: memref<16x1xf32, #tpu.memory_space<vmem>>, %arg7: memref<16x1xf32, #tpu.memory_space<vmem>>, %arg8: memref<16x1xf32, #tpu.memory_space<vmem>>) attributes {dimension_semantics = [#tpu.dimension_semantics<parallel>, #tpu.dimension_semantics<arbitrary>], iteration_bounds = array<i64: 1, 1>, scalar_prefetch = 0 : i64, scratch_operands = 3 : i64, tpu.core_type = #tpu.core_type<tc>, window_params = [{transform_indices = @transform_0, window_bounds = array<i64: 16, 128>}, {transform_indices = @transform_1, window_bounds = array<i64: 128, 128>}, {transform_indices = @transform_2, window_bounds = array<i64: 16, 1>}, {transform_indices = @transform_3, window_bounds = array<i64: 16, 1>}]} {
    %c0_i32 = arith.constant 0 : i32
    %0 = arith.cmpi eq, %arg1, %c0_i32 : i32
    %1 = arith.extui %0 : i1 to i32
    %c0_i32_0 = arith.constant 0 : i32
    %2 = arith.cmpi ne, %1, %c0_i32_0 : i32
    scf.if %2 {
      %cst_25 = arith.constant -1.000000e+30 : f32
      %43 = vector.broadcast %cst_25 : f32 to vector<16x1xf32>
      %c0_26 = arith.constant 0 : index
      %c0_27 = arith.constant 0 : index
      %44 = vector.load %arg6[%c0_26, %c0_27] : memref<16x1xf32, #tpu.memory_space<vmem>>, vector<16x1xf32>
      tpu.vector_store %arg6[%c0_26, %c0_27], %43 {strides = array<i32>} : memref<16x1xf32, #tpu.memory_space<vmem>>, vector<16x1xf32>,
      %cst_28 = arith.constant 0.000000e+00 : f32
      %45 = vector.broadcast %cst_28 : f32 to vector<16x1xf32>
      %c0_29 = arith.constant 0 : index
      %c0_30 = arith.constant 0 : index
      %46 = vector.load %arg7[%c0_29, %c0_30] : memref<16x1xf32, #tpu.memory_space<vmem>>, vector<16x1xf32>
      tpu.vector_store %arg7[%c0_29, %c0_30], %45 {strides = array<i32>} : memref<16x1xf32, #tpu.memory_space<vmem>>, vector<16x1xf32>,
      %cst_31 = arith.constant 0.000000e+00 : f32
      %47 = vector.broadcast %cst_31 : f32 to vector<16x1xf32>
      %c0_32 = arith.constant 0 : index
      %c0_33 = arith.constant 0 : index
      %48 = vector.load %arg8[%c0_32, %c0_33] : memref<16x1xf32, #tpu.memory_space<vmem>>, vector<16x1xf32>
      tpu.vector_store %arg8[%c0_32, %c0_33], %47 {strides = array<i32>} : memref<16x1xf32, #tpu.memory_space<vmem>>, vector<16x1xf32>,
    } else {
    }
    %c0 = arith.constant 0 : index
    %c0_1 = arith.constant 0 : index
    %3 = vector.load %arg2[%c0, %c0_1] : memref<16x128xbf16, #tpu.memory_space<vmem>>, vector<16x128xbf16>
    %c0_2 = arith.constant 0 : index
    %c0_3 = arith.constant 0 : index
    %4 = vector.load %arg3[%c0_2, %c0_3] : memref<128x128xbf16, #tpu.memory_space<vmem>>, vector<128x128xbf16>
    %cst = arith.constant dense<0.000000e+00> : vector<16x128xf32>
    %5 = tpu.matmul %3, %4, %cst {dimension_numbers = #tpu.dot_dimension_numbers<[1], [0], [0], [1], [0, 0, 1, 1], [], []>} : vector<16x128xbf16>, vector<128x128xbf16>, vector<16x128xf32> -> vector<16x128xf32>
    %c128_i32 = arith.constant 128 : i32
    %6 = arith.muli %arg1, %c128_i32 : i32
    %7 = tpu.iota {dimensions = array<i32: 1>} : vector<16x128xi32>
    %8 = vector.broadcast %6 : i32 to vector<16x128xi32>
    %9 = arith.addi %8, %7 : vector<16x128xi32>
    %c64_i32 = arith.constant 64 : i32
    %10 = vector.broadcast %c64_i32 : i32 to vector<16x128xi32>
    %11 = arith.cmpi slt, %9, %10 : vector<16x128xi32>
    %cst_4 = arith.constant -1.000000e+30 : f32
    %12 = vector.broadcast %cst_4 : f32 to vector<16x128xf32>
    %13 = arith.select %11, %5, %12 : vector<16x128xi1>, vector<16x128xf32>
    %c0_5 = arith.constant 0 : index
    %c0_6 = arith.constant 0 : index
    %14 = vector.load %arg4[%c0_5, %c0_6] : memref<16x1xi32, #tpu.memory_space<vmem>>, vector<16x1xi32>
    %c0_7 = arith.constant 0 : index
    %c0_8 = arith.constant 0 : index
    %15 = vector.load %arg6[%c0_7, %c0_8] : memref<16x1xf32, #tpu.memory_space<vmem>>, vector<16x1xf32>
    %cst_9 = arith.constant dense<0xFF800000> : vector<16xf32>
    %16 = vector.multi_reduction <maximumf>, %13, %cst_9 [1] : vector<16x128xf32> to vector<16xf32>
    %17 = vector.shape_cast %16 : vector<16xf32> to vector<16x1xf32>
    %18 = arith.maximumf %15, %17 : vector<16x1xf32>
    %c0_10 = arith.constant 0 : index
    %c0_11 = arith.constant 0 : index
    %19 = vector.load %arg7[%c0_10, %c0_11] : memref<16x1xf32, #tpu.memory_space<vmem>>, vector<16x1xf32>
    %20 = arith.subf %15, %18 : vector<16x1xf32>
    %21 = math.exp %20 : vector<16x1xf32>
    %22 = arith.mulf %19, %21 : vector<16x1xf32>
    %23 = vector.broadcast %18 : vector<16x1xf32> to vector<16x128xf32>
    %24 = arith.subf %13, %23 : vector<16x128xf32>
    %25 = math.exp %24 : vector<16x128xf32>
    %cst_12 = arith.constant dense<0.000000e+00> : vector<16xf32>
    %26 = vector.multi_reduction <add>, %25, %cst_12 [1] : vector<16x128xf32> to vector<16xf32>
    %27 = vector.shape_cast %26 : vector<16xf32> to vector<16x1xf32>
    %28 = arith.addf %22, %27 : vector<16x1xf32>
    %c0_13 = arith.constant 0 : index
    %c0_14 = arith.constant 0 : index
    %29 = vector.load %arg7[%c0_13, %c0_14] : memref<16x1xf32, #tpu.memory_space<vmem>>, vector<16x1xf32>
    tpu.vector_store %arg7[%c0_13, %c0_14], %28 {strides = array<i32>} : memref<16x1xf32, #tpu.memory_space<vmem>>, vector<16x1xf32>,
    %c0_15 = arith.constant 0 : index
    %c0_16 = arith.constant 0 : index
    %30 = vector.load %arg6[%c0_15, %c0_16] : memref<16x1xf32, #tpu.memory_space<vmem>>, vector<16x1xf32>
    tpu.vector_store %arg6[%c0_15, %c0_16], %18 {strides = array<i32>} : memref<16x1xf32, #tpu.memory_space<vmem>>, vector<16x1xf32>,
    %c0_17 = arith.constant 0 : index
    %c0_18 = arith.constant 0 : index
    %31 = vector.load %arg8[%c0_17, %c0_18] : memref<16x1xf32, #tpu.memory_space<vmem>>, vector<16x1xf32>
    %32 = vector.broadcast %14 : vector<16x1xi32> to vector<16x128xi32>
    %33 = arith.cmpi eq, %9, %32 : vector<16x128xi32>
    %cst_19 = arith.constant 0.000000e+00 : f32
    %34 = vector.broadcast %cst_19 : f32 to vector<16x128xf32>
    %35 = arith.select %33, %13, %34 : vector<16x128xi1>, vector<16x128xf32>
    %cst_20 = arith.constant dense<0.000000e+00> : vector<16xf32>
    %36 = vector.multi_reduction <add>, %35, %cst_20 [1] : vector<16x128xf32> to vector<16xf32>
    %37 = vector.shape_cast %36 : vector<16xf32> to vector<16x1xf32>
    %38 = arith.addf %31, %37 : vector<16x1xf32>
    %c0_21 = arith.constant 0 : index
    %c0_22 = arith.constant 0 : index
    %39 = vector.load %arg8[%c0_21, %c0_22] : memref<16x1xf32, #tpu.memory_space<vmem>>, vector<16x1xf32>
    tpu.vector_store %arg8[%c0_21, %c0_22], %38 {strides = array<i32>} : memref<16x1xf32, #tpu.memory_space<vmem>>, vector<16x1xf32>,
    %c0_i32_23 = arith.constant 0 : i32
    %40 = arith.cmpi eq, %arg1, %c0_i32_23 : i32
    %41 = arith.extui %40 : i1 to i32
    %c0_i32_24 = arith.constant 0 : i32
    %42 = arith.cmpi ne, %41, %c0_i32_24 : i32
    scf.if %42 {
      %c0_25 = arith.constant 0 : index
      %c0_26 = arith.constant 0 : index
      %43 = vector.load %arg4[%c0_25, %c0_26] : memref<16x1xi32, #tpu.memory_space<vmem>>, vector<16x1xi32>
      %c-100_i32 = arith.constant -100 : i32
      %44 = vector.broadcast %c-100_i32 : i32 to vector<16x1xi32>
      %45 = arith.cmpi ne, %43, %44 : vector<16x1xi32>
      %46 = arith.extui %45 : vector<16x1xi1> to vector<16x1xi32>
      %47 = arith.sitofp %46 : vector<16x1xi32> to vector<16x1xf32>
      %c0_27 = arith.constant 0 : index
      %c0_28 = arith.constant 0 : index
      %48 = vector.load %arg6[%c0_27, %c0_28] : memref<16x1xf32, #tpu.memory_space<vmem>>, vector<16x1xf32>
      %c0_29 = arith.constant 0 : index
      %c0_30 = arith.constant 0 : index
      %49 = vector.load %arg7[%c0_29, %c0_30] : memref<16x1xf32, #tpu.memory_space<vmem>>, vector<16x1xf32>
      %50 = math.log %49 : vector<16x1xf32>
      %51 = arith.addf %48, %50 : vector<16x1xf32>
      %c0_31 = arith.constant 0 : index
      %c0_32 = arith.constant 0 : index
      %52 = vector.load %arg8[%c0_31, %c0_32] : memref<16x1xf32, #tpu.memory_space<vmem>>, vector<16x1xf32>
      %53 = arith.subf %51, %52 : vector<16x1xf32>
      %54 = arith.mulf %53, %47 : vector<16x1xf32>
      %c0_33 = arith.constant 0 : index
      %c0_34 = arith.constant 0 : index
      %55 = vector.load %arg5[%c0_33, %c0_34] : memref<16x1xf32, #tpu.memory_space<vmem>>, vector<16x1xf32>
      tpu.vector_store %arg5[%c0_33, %c0_34], %54 {strides = array<i32>} : memref<16x1xf32, #tpu.memory_space<vmem>>, vector<16x1xf32>,
    } else {
    }
    return
  }
  func.func @transform_0(%arg0: i32, %arg1: i32) -> (i32, i32) {
    %c0_i32 = arith.constant 0 : i32
    %c0_i32_0 = arith.constant 0 : i32
    return %arg0, %c0_i32 : i32, i32
  }
  func.func @transform_1(%arg0: i32, %arg1: i32) -> (i32, i32) {
    %c0_i32 = arith.constant 0 : i32
    %c0_i32_0 = arith.constant 0 : i32
    return %c0_i32, %arg1 : i32, i32
  }
  func.func @transform_2(%arg0: i32, %arg1: i32) -> (i32, i32) {
    %c0_i32 = arith.constant 0 : i32
    %c0_i32_0 = arith.constant 0 : i32
    return %arg0, %c0_i32 : i32, i32
  }
  func.func @transform_3(%arg0: i32, %arg1: i32) -> (i32, i32) {
    %c0_i32 = arith.constant 0 : i32
    %c0_i32_0 = arith.constant 0 : i32
    return %arg0, %c0_i32 : i32, i32
  }
}

</mosaic_0001>

<bundles_post_ra>
// kernel: arat5_revdict_forward.3
= control target key start
LH: loop header
LB: loop body
LE: loop exit
PB: predicated region body
PF: predicated region fallthrough
CT: control target
= control target key end

     0   :  { %v212_v0 = vmov 0.0   ;;  %vm213_vm0 = vmmov 0   ;;  %s270_s1 = inlined_call_operand.vmem [shape: bf16[128,128], index: 1, kind: input, shape index: {}]   ;;  %s271_s0 = inlined_call_operand.vmem [shape: bf16[16,128], index: 0, kind: input, shape index: {}]   ;;  %s272_s2 = inlined_call_operand.vmem [shape: f32[1,128], index: 2, kind: input, shape index: {}]   ;;  %s273_s3 = inlined_call_operand.vmem [shape: f32[16,128], index: 3, kind: output, shape index: {}]  }
   0x1   :  { %181 = vmatprep.subr.bf16.mxu0 %v212_v0  ;;  %v203_v1 = vld [vmem:[%s270_s1] sm:$0xff]   ;;  %197 = vmatprep.mubr.msk.bf16.mxu0 %vm213_vm0, %v212_v0  ;;  %v204_v2 = vld [vmem:[%s270_s1 + $0x8] sm:$0xff]   ;;  %v205_v3 = vld [vmem:[%s270_s1 + $0x10] sm:$0xff]  }
   0x2   :  { %182 = vmatpush3.bf16.msra.mxu0 %v203_v1  ;;  %v206_v4 = vld [vmem:[%s270_s1 + $0x18] sm:$0xff]   ;;  %v207_v5 = vld [vmem:[%s270_s1 + $0x20] sm:$0xff]   ;;  %v208_v6 = vld [vmem:[%s270_s1 + $0x28] sm:$0xff]  }
   0x3   :  { %183 = vmatprep.subr.bf16.mxu0 %v212_v0  ;;  %v209_v7 = vld [vmem:[%s270_s1 + $0x30] sm:$0xff]   ;;  %v210_v8 = vld [vmem:[%s270_s1 + $0x38] sm:$0xff]   ;;  %v211_v9 = vld [vmem:[%s271_s0] sm:$0xff]  }
   0x4   :  { %v171_v10 = vld [vmem:[%s272_s2] ss:$0 sm:$0xff] }
   0x6   :  { %184 = vmatpush3.bf16.msra.mxu0 %v204_v2 }
   0x7   :  { %185 = vmatprep.subr.bf16.mxu0 %v212_v0 }
   0xa   :  { %186 = vmatpush3.bf16.msra.mxu0 %v205_v3 }
   0xb   :  { %187 = vmatprep.subr.bf16.mxu0 %v212_v0 }
   0xe   :  { %188 = vmatpush3.bf16.msra.mxu0 %v206_v4 }
   0xf   :  { %189 = vmatprep.subr.bf16.mxu0 %v212_v0 }
  0x12   :  { %190 = vmatpush3.bf16.msra.mxu0 %v207_v5 }
  0x13   :  { %191 = vmatprep.subr.bf16.mxu0 %v212_v0 }
  0x16   :  { %192 = vmatpush3.bf16.msra.mxu0 %v208_v6 }
  0x17   :  { %193 = vmatprep.subr.bf16.mxu0 %v212_v0 }
  0x1a   :  { %194 = vmatpush3.bf16.msra.mxu0 %v209_v7 }
  0x1b   :  { %195 = vmatprep.subr.bf16.mxu0 %v212_v0 }
  0x1e   :  { %196 = vmatpush3.bf16.msra.mxu0 %v210_v8 }
  0x21   :  { %198 = vmatmul.mubr.bf16.vlgmr.msra.gmra.mrb[0].mxu0 %v211_v9 }
  0xf4   :  { %v129_v11 = vpop.f32.mrb[0].mxu0 }
  0xf5   :  { %v152_v12 = vadd.f32 %v171_v10, %v129_v11  ;;  %v199_v13 = vpop.f32.mrb[1].mxu0 }
  0xf6   :  { %v132_v14 = vpop.f32.mrb[2].mxu0 }
  0xf7   :  { %v154_v15 = vmax.f32 %v152_v12, 0.0  ;;  %v153_v16 = vadd.f32 %v171_v10, %v132_v14  ;;  %v200_v17 = vpop.f32.mrb[3].mxu0 }
  0xf9   :  { %156 = vst [vmem:[%s273_s3] sm:$0xff] %v154_v15  ;;  %v155_v18 = vmax.f32 %v153_v16, 0.0 }
  0xfb   :  { %157 = vst [vmem:[%s273_s3 + $0x8] sm:$0xff] %v155_v18 }

// kernel: arat5_revdict_forward.5
= control target key start
LH: loop header
LB: loop body
LE: loop exit
PB: predicated region body
PF: predicated region fallthrough
CT: control target
= control target key end

     0   :  { %9 = vsyncpa [#allocation5], 0  ;;  %s1006_s0 = inlined_call_operand.vmem [shape: f32[2,1,128], index: 0, kind: input, shape index: {}]   ;;  %s1007_s1 = inlined_call_operand.vmem [shape: bf16[2,128,128], index: 1, kind: input, shape index: {}]   ;;  %s1008_s2 = inlined_call_operand.vmem [shape: bf16[128,128], index: 2, kind: input, shape index: {}]   ;;  %s1009_s3 = inlined_call_operand.vmem [shape: f32[1,128], index: 3, kind: input, shape index: {}]   ;;  %s1010_s4 = inlined_call_operand.hbm [shape: f32[2,1,128], index: 4, kind: output, shape index: {}]  }
   0x1   :  { %11 = vsyncpa [#allocation5 + $0x1], 0  ;;  %s862_s15 = smov 0   ;;  %s864_s16 = smov 0  }
   0x2   :  { %s866_s17 = smov 0   ;;  %s868_s18 = smov 0  }
   0x3   :  { %s870_s19 = smov 0   ;;  %s872_s20 = smov 0  }
   0x4 LB: > { %s591_s21 = sadd.s32 4294967295, %s831_s20   ;;  %s592_s22 = sadd.s32 4294967294, %s831_s20   ;;  %s831_s20 = sphi %s872_s20, %s17_s20   ;;  %s827_s19 = sphi %s870_s19, %s1017_s19   ;;  %s823_s18 = sphi %s868_s18, %s1016_s18   ;;  %s819_s17 = sphi %s866_s17, %s1015_s17   ;;  %s815_s16 = sphi %s864_s16, %s1014_s16   ;;  %s811_s15 = sphi %s862_s15, %s1013_s15  }
   0x5   : > { %s29_s23 = sadd.s32 1, %s827_s19  ;;  %s134_s24 = sadd.s32 1, %s819_s17 }
   0x6   : > { %p31_p0 = scmp.ge.s32.totalorder %s29_s23, 2  ;;  %p144_p1 = scmp.ne.s32.totalorder %s819_s17, %s815_s16 }
   0x7   : > { %p145_p2 = scmp.eq.s32.totalorder %s591_s21, 1  ;;  %p150_p3 = scmp.ne.s32.totalorder %s815_s16, %s811_s15 }
   0x8   : > { %s1019_s23 = smov (%p31_p0, %s29_s23), 0  ;;  %p151_p5 = scmp.eq.s32.totalorder %s592_s22, 1 }
   0x9   : > { %p902_p4 = por %p145_p2, %p144_p1  ;;  %s131_s26 = ssub.s32 %s827_s19, %s1019_s23 }
   0xa   : > { %p595_p6 = scmp.ge.s32.totalorder %s831_s20, 1  ;;  %p132_p7 = scmp.eq.s32.totalorder %s131_s26, 0 }
   0xb   : > { %p909_p8 = por %p151_p5, %p150_p3  ;;  %p197_p9 = scmp.lt.s32.totalorder %s831_s20, 3 }
   0xc   : > { %s915_s28 = scalar_select %p132_p7, %s819_s17, %s134_s24  }
   0xd   : > { %p198_p10 = pnand %p595_p6, %p197_p9 }
   0xe   : > { %p232_p11 = scmp.lt.s32.totalorder (!%p198_p10), %s823_s18, 1  ;;  %vm254_vm0 = vcmask (!%p198_p10), 0   ;;  %v833_v0 = vmov (!%p198_p10), 0.0   ;;  %vm834_vm1 = vmmov (!%p198_p10), 0   ;;  %vm366_vm2 = vcmask (!%p198_p10), 1040384   ;;  %v743_v13 = vld [vmem:[%s1008_s2] sm:$0xff] (!%p198_p10)  }
   0xf   : > { %201 = sbr.rel (%p198_p10) target bundleno = 554 (0x22a), region = 36  ;;  %636 = vmatprep.subr.bf16.mxu0 (!%p198_p10), %v833_v0  ;;  %253 = vst [vmem:[#allocation2] sm:$0x1] (!%p198_p10), %v833_v0  ;;  %652 = vmatprep.mubr.msk.bf16.mxu0 (!%p198_p10), %vm834_vm1, %v833_v0  ;;  %255 = vst.msk [vmem:[#allocation3] sm:$0x1] (!%p198_p10), %vm254_vm0, %v833_v0  ;;  %v835_v9 = vmov (!%p198_p10), 0   ;;  %v385_v33 = vlaneseq (!%p198_p10) }
  0x10   : > { %656 = vmatprep.subr.bf16.mxu1 (!%p198_p10), %v833_v0  ;;  %672 = vmatprep.mubr.msk.bf16.mxu1 (!%p198_p10), %vm834_vm1, %v833_v0  ;;  %v744_v14 = vld [vmem:[%s1008_s2 + $0x8] sm:$0xff] (!%p198_p10)   ;;  %v745_v15 = vld [vmem:[%s1008_s2 + $0x10] sm:$0xff] (!%p198_p10)   ;;  %v746_v16 = vld [vmem:[%s1008_s2 + $0x18] sm:$0xff] (!%p198_p10)   ;;  %s230_s11 = sand.u32 (!%p198_p10), 1, %s815_s16   ;;  %s614_s14 = sshll.u32 (!%p198_p10), %s823_s18, 4 }
  0x11   : > { %734 = vset.pattern.permute.xlu0 (!%p198_p10), %v835_v9  ;;  %657 = vmatpush3.bf16.msra.mxu1 (!%p198_p10), %v743_v13  ;;  %v747_v17 = vld [vmem:[%s1008_s2 + $0x20] sm:$0xff] (!%p198_p10)   ;;  %v748_v18 = vld [vmem:[%s1008_s2 + $0x28] sm:$0xff] (!%p198_p10)   ;;  %v749_v19 = vld [vmem:[%s1008_s2 + $0x30] sm:$0xff] (!%p198_p10)   ;;  %v386_v34 = vshrl.u32 (!%p198_p10), %v385_v33, 7  ;;  %s231_s21 = scalar_lea.vmem (!%p198_p10), [#allocation4], %s230_s11  ;;  %s498_s30 = scalar_lea.sflag (!%p198_p10), [#allocation5], %s230_s11 }
  0x12   : > { %658 = vmatprep.subr.bf16.mxu1 (!%p198_p10), %v833_v0  ;;  %v750_v26 = vld [vmem:[%s1008_s2 + $0x38] sm:$0xff] (!%p198_p10)   ;;  %v407_v41 = vld [vmem:[%s1009_s3] sm:$0x1] (!%p198_p10)  ;;  %s510_s22 = sshll.u32 (!%p198_p10), %s231_s21, 4  ;;  %s836_s5 = smov (!%p198_p10), [#allocation4]   ;;  %s961_s22 = int_to_ptr.vmem [resolvable:$true] %s510_s22 }
  0x13   : > { %v387_v35 = vsub.s32 (!%p198_p10), 0, %v386_v34 }
  0x15   : > { %659 = vmatpush3.bf16.msra.mxu1 (!%p198_p10), %v744_v14 }
  0x16   : > { %s233_s29 = scalar_select %p232_p11, %s823_s18, 1  ;;  %660 = vmatprep.subr.bf16.mxu1 %v833_v0  ;;  %v365_v20 = vld [vmem:[#allocation3] sm:$0x1]  ;;  %v273_v27 = vld [vmem:[#allocation2] sm:$0x1] }
  0x17   : > { %s753_s18 = scalar_lea.vmem %s961_s22, 16 }
  0x18   : > { %s237_s6 = scalar_lea.vmem %s1006_s0, %s233_s29  ;;  %s617_s7 = sshll.u32 %s233_s29, 6 }
  0x19   : > { %s246_s10 = scalar_lea.vmem %s1007_s1, %s617_s7  ;;  %v256_v1 = vld [vmem:[%s237_s6] sm:$0x1]  ;;  %661 = vmatpush3.bf16.msra.mxu1 %v745_v15  ;;  %s959_s29 = scalar_lea.hbm %s1010_s4, %s614_s14 }
  0x1a   : > { %v367_v2 = vsel %vm366_vm2, %v256_v1, 0.0  ;;  %v735_v3 = vld [vmem:[%s246_s10] sm:$0xff]   ;;  %v736_v4 = vld [vmem:[%s246_s10 + $0x8] sm:$0xff]   ;;  %v737_v5 = vld [vmem:[%s246_s10 + $0x10] sm:$0xff]   ;;  %v274_v12 = vpack.c.bf16 %v256_v1, %v256_v1  ;;  %662 = vmatprep.subr.bf16.mxu1 %v833_v0  ;;  %p754_p12 = scmp.ne.s32.totalorder %s961_s22, %s753_s18  ;;  %s757_s6 = sshll.u32 %s836_s5, 4  ;;  %s758_s6 = int_to_ptr.vmem [resolvable:$false] %s757_s6 }
  0x1b   : > { %368 = vadd.xlane.f32.xlu0 %v367_v2  ;;  %637 = vmatpush3.bf16.msra.mxu0 %v735_v3  ;;  %v738_v6 = vld [vmem:[%s246_s10 + $0x18] sm:$0xff]   ;;  %v739_v7 = vld [vmem:[%s246_s10 + $0x20] sm:$0xff]   ;;  %v740_v8 = vld [vmem:[%s246_s10 + $0x28] sm:$0xff]   ;;  %s759_s7 = scalar_lea.vmem %s758_s6, 32  ;;  %p760_p1 = scmp.lt.s32.totalorder %s961_s22, %s758_s6 }
  0x1c   : > { %638 = vmatprep.subr.bf16.mxu0 %v833_v0  ;;  %v741_v10 = vld [vmem:[%s246_s10 + $0x30] sm:$0xff]   ;;  %v742_v11 = vld [vmem:[%s246_s10 + $0x38] sm:$0xff]   ;;  %p755_p13 = pnand %p754_p12, %p902_p4  ;;  %p761_p2 = scmp.lt.s32.totalorder %s759_s7, %s753_s18 }
  0x1d   : > { %663 = vmatpush3.bf16.msra.mxu1 %v746_v16 }
  0x1e   : > { %664 = vmatprep.subr.bf16.mxu1 %v833_v0  ;;  %p756_p0 = pneg %p755_p13  ;;  %p762_p3 = por %p761_p2, %p760_p1 }
  0x1f   : > { %639 = vmatpush3.bf16.msra.mxu0 %v736_v4 }
  0x20   : > { %640 = vmatprep.subr.bf16.mxu0 %v833_v0  ;;  %p763_p5 = pnand %p762_p3, %p756_p0 }
  0x21   : > { %665 = vmatpush3.bf16.msra.mxu1 %v747_v17 }
  0x22   : > { %666 = vmatprep.subr.bf16.mxu1 %v833_v0 }
  0x23   : > { %641 = vmatpush3.bf16.msra.mxu0 %v737_v5 }
  0x24   : > { %642 = vmatprep.subr.bf16.mxu0 %v833_v0 }
  0x25   : > { %667 = vmatpush3.bf16.msra.mxu1 %v748_v18 }
  0x26   : > { %668 = vmatprep.subr.bf16.mxu1 %v833_v0 }
  0x27   : > { %643 = vmatpush3.bf16.msra.mxu0 %v738_v6 }
  0x28   : > { %644 = vmatprep.subr.bf16.mxu0 %v833_v0 }
  0x29   : > { %669 = vmatpush3.bf16.msra.mxu1 %v749_v19 }
  0x2a   : > { %670 = vmatprep.subr.bf16.mxu1 %v833_v0 }
  0x2b   : > { %645 = vmatpush3.bf16.msra.mxu0 %v739_v7 }
  0x2c   : > { %646 = vmatprep.subr.bf16.mxu0 %v833_v0 }
  0x2d   : > { %671 = vmatpush3.bf16.msra.mxu1 %v750_v26 }
  0x2f   : > { %647 = vmatpush3.bf16.msra.mxu0 %v740_v8 }
  0x30   : > { %648 = vmatprep.subr.bf16.mxu0 %v833_v0 }
  0x33   : > { %649 = vmatpush3.bf16.msra.mxu0 %v741_v10 }
  0x34   : > { %650 = vmatprep.subr.bf16.mxu0 %v833_v0 }
  0x37   : > { %651 = vmatpush3.bf16.msra.mxu0 %v742_v11 }
  0x3a   : > { %653 = vmatmul.mubr.bf16.vlgmr.msra.gmra.mrb[0].mxu0 %v274_v12 }
  0xa8   : > { %v369_v21 = vpop.xlane.xlu0 %368 }
  0xa9   : > { %v370_v22 = vadd.f32 %v369_v21, %v365_v20 }
  0xab   : > { %372 = vst.msk [vmem:[#allocation3] sm:$0x1] %vm254_vm0, %v370_v22 }
  0xb2   : > { %v376_v23 = vld [vmem:[#allocation3] sm:$0x1] }
  0xb3   : > { %v377_v24 = vmax.f32 %v376_v23, 1.0 }
  0xb5   : > { %751 = vrcp.f32 %v377_v24 }
  0xbf   : > { %v752_v25 = vpop.eup %751 }
  0xc0   : > { %382 = vperm.xlu0 %734, %v752_v25  }
 0x10d   : > { %v357_v28 = vpop.f32.mrb[0].mxu0 }
 0x10e   : > { %v363_v29 = vadd.f32 %v357_v28, %v273_v27  ;;  %v654_v30 = vpop.f32.mrb[1].mxu0 }
 0x10f   : > { %v360_v31 = vpop.f32.mrb[2].mxu0 }
 0x110   : > { %364 = vst [vmem:[#allocation2] sm:$0x1] %v363_v29  ;;  %v655_v32 = vpop.f32.mrb[3].mxu0 }
 0x117   : > { %v379_v37 = vld [vmem:[#allocation2] sm:$0x1] }
 0x13f   : > { %v383_v36 = vpop.permute.xlu0 %382 }
 0x140   : > { %v388_v38 = vrot.slane %v383_v36, %v387_v35 }
 0x142   : > { %v389_v39 = vmul.f32 %v388_v38, %v379_v37 }
 0x144   : > { %v390_v40 = vpack.c.bf16 %v389_v39, %v389_v39 }
 0x146   : > { %673 = vmatmul.mubr.bf16.vlgmr.msra.gmra.mrb[0].mxu1 %v390_v40 }
 0x219   : > { %v490_v42 = vpop.f32.mrb[0].mxu1 }
 0x21a   : > { %v491_v43 = vadd.f32 %v490_v42, %v407_v41  ;;  %v674_v44 = vpop.f32.mrb[1].mxu1 }
 0x21b   : > { %v493_v45 = vpop.f32.mrb[2].mxu1 }
 0x21c   : > { %496 = vst [vmem:[%s231_s21] sm:$0x1] %v491_v43  ;;  %v675_v46 = vpop.f32.mrb[3].mxu1 }
 0x21d   : > { %766 = shalt.err (!%p763_p5)
}
 0x21e   : > { %s767_s8 = scalar_lea.hbm %s959_s29, 16  ;;  %s771_s11 = scalar_lea.hbm %s1010_s4, 32 }
 0x21f   : > { %p768_p6 = scmp.ne.s32.totalorder %s959_s29, %s767_s8  ;;  %p772_p10 = scmp.lt.u32.totalorder %s959_s29, %s1010_s4 }
 0x220   : > { %p773_p11 = scmp.lt.u32.totalorder %s771_s11, %s767_s8  ;;  %p775_p13 = scmp.lt.u32.totalorder %s767_s8, %s959_s29 }
 0x221   : > { %p769_p7 = pnand %p768_p6, %p902_p4 }
 0x222   : > { %p774_p12 = por %p773_p11, %p772_p10 }
 0x223   : > { %p770_p9 = pneg %p769_p7 }
 0x224   : > { %p776_p0 = por %p775_p13, %p774_p12 }
 0x226   : > { %p777_p1 = pnand %p776_p0, %p770_p9 }
 0x228   : > { %780 = shalt.err (!%p777_p1)
}
 0x229   : > { %676 = dma.vmem_to_hbm [thread:$0]  (%p902_p4), %s961_s22, 16, %s959_s29, %s498_s30  }
 0x22a PF: > { %p682_p2 = scmp.ge.s32.totalorder %s831_s20, 2  ;;  %s522_s14 = sand.u32 1, %s811_s15  }
 0x22b   : > { %s523_s21 = scalar_lea.sflag [#allocation5], %s522_s14 }
 0x22c   : > { %p679_p3 = pnand %p682_p2, %p909_p8 }
 0x22e   : > { %806 = dma.done.wait (!%p679_p3), %s523_s21, 16  }
 0x22f   : > { %808 = vsyncadd (!%p679_p3), %s523_s21, 4294967280  ;;  %s17_s20 = sadd.s32 1, %s831_s20   ;;  %s1013_s15 = smov %s815_s16 }
 0x230   : > { %p14_p5 = scmp.ge.s32.totalorder %s17_s20, 4   ;;  %s1014_s16 = smov %s819_s17 }
 0x231   : > { %s1015_s17 = smov %s915_s28  ;;  %s1016_s18 = smov %s827_s19 }
 0x232   : > { %s1017_s19 = smov %s1019_s23  ;;  %16 = sbr.rel (!%p14_p5) target bundleno = 4 (0x4), region = 82 }
 0x239   :  { %527 = vsyncpa [#allocation5], 1 }
 0x23a   :  { %529 = vsyncpa [#allocation5 + $0x1], 1 }

// kernel: arat5_revdict_forward.4
= control target key start
LH: loop header
LB: loop body
LE: loop exit
PB: predicated region body
PF: predicated region fallthrough
CT: control target
= control target key end

     0   :  { %v314_v0 = vmov 0.0   ;;  %vm315_vm0 = vmmov 0   ;;  %v316_v10 = vmov 0   ;;  %vm19_vm1 = vcmask 7168   ;;  %s414_s1 = inlined_call_operand.vmem [shape: bf16[128,128], index: 1, kind: input, shape index: {}]   ;;  %s415_s0 = inlined_call_operand.vmem [shape: bf16[16,128], index: 0, kind: input, shape index: {}]   ;;  %s416_s2 = inlined_call_operand.vmem [shape: s32[16,1], index: 2, kind: input, shape index: {}]   ;;  %s417_s3 = inlined_call_operand.vmem [shape: f32[16,1], index: 3, kind: output, shape index: {}]  }
   0x1   :  { %267 = vmatprep.subr.bf16.mxu0 %v314_v0  ;;  %v293_v1 = vld [vmem:[%s414_s1] sm:$0xff]   ;;  %283 = vmatprep.mubr.msk.bf16.mxu0 %vm315_vm0, %v314_v0  ;;  %v294_v2 = vld [vmem:[%s414_s1 + $0x8] sm:$0xff]   ;;  %v295_v3 = vld [vmem:[%s414_s1 + $0x10] sm:$0xff]   ;;  %v317_v11 = vmov -1e+30   ;;  %22 = vst.msk [vmem:[#allocation3] sm:$0xff] %vm19_vm1, %v314_v0  ;;  %v140_v12 = vlaneseq }
   0x2   :  { %268 = vmatpush3.bf16.msra.mxu0 %v293_v1  ;;  %v296_v4 = vld [vmem:[%s414_s1 + $0x18] sm:$0xff]   ;;  %v297_v5 = vld [vmem:[%s414_s1 + $0x20] sm:$0xff]   ;;  %v298_v6 = vld [vmem:[%s414_s1 + $0x28] sm:$0xff]   ;;  %292 = vset.pattern.permute.xlu0 %v316_v10  ;;  %20 = vst.msk [vmem:[#allocation2] sm:$0xff] %vm19_vm1, %v317_v11 }
   0x3   :  { %269 = vmatprep.subr.bf16.mxu0 %v314_v0  ;;  %v299_v7 = vld [vmem:[%s414_s1 + $0x30] sm:$0xff]   ;;  %v300_v8 = vld [vmem:[%s414_s1 + $0x38] sm:$0xff]   ;;  %v301_v9 = vld [vmem:[%s415_s0] sm:$0xff]   ;;  %291 = vset.pattern.permute.xlu1 %v316_v10  ;;  %21 = vst.msk [vmem:[#allocation2 + $0x8] sm:$0xff] %vm19_vm1, %v317_v11  ;;  %v141_v13 = vand.u32 127, %v140_v12 }
   0x4   :  { %23 = vst.msk [vmem:[#allocation3 + $0x8] sm:$0xff] %vm19_vm1, %v314_v0  ;;  %24 = vst.msk [vmem:[#allocation4] sm:$0xff] %vm19_vm1, %v314_v0  ;;  %v387_v20 = vld [vmem:[%s416_s2] sm:$0xff]  ;;  %v395_v29 = vld [vmem:[%s416_s2 + $0x8] sm:$0xff] }
   0x5   :  { %25 = vst.msk [vmem:[#allocation4 + $0x8] sm:$0xff] %vm19_vm1, %v314_v0  ;;  %vm144_vm2 = vcmp.lt.s32.totalorder %v141_v13, 64  ;;  %vm219_vm5 = vcmp.ne.s32.totalorder %v387_v20, 4294967196  ;;  %vm220_vm6 = vcmp.ne.s32.totalorder %v395_v29, 4294967196 }
   0x6   :  { %270 = vmatpush3.bf16.msra.mxu0 %v294_v2  ;;  %v257_v11 = vsel %vm220_vm6, 1.0, %v314_v0 }
   0x7   :  { %271 = vmatprep.subr.bf16.mxu0 %v314_v0 }
   0x8   :  { %v157_v48 = vld [vmem:[#allocation3] sm:$0xff] }
   0x9   :  { %v149_v21 = vld [vmem:[#allocation2] sm:$0xff] }
   0xa   :  { %272 = vmatpush3.bf16.msra.mxu0 %v295_v3  ;;  %v150_v24 = vld [vmem:[#allocation2 + $0x8] sm:$0xff] }
   0xb   :  { %273 = vmatprep.subr.bf16.mxu0 %v314_v0  ;;  %v194_v42 = vld [vmem:[#allocation4] sm:$0xff]  ;;  %v158_v52 = vld [vmem:[#allocation3 + $0x8] sm:$0xff] }
   0xc   :  { %v195_v57 = vld [vmem:[#allocation4 + $0x8] sm:$0xff] }
   0xe   :  { %274 = vmatpush3.bf16.msra.mxu0 %v296_v4  ;;  %v256_v4 = vsel %vm219_vm5, 1.0, %v314_v0 }
   0xf   :  { %275 = vmatprep.subr.bf16.mxu0 %v314_v0 }
  0x12   :  { %276 = vmatpush3.bf16.msra.mxu0 %v297_v5 }
  0x13   :  { %277 = vmatprep.subr.bf16.mxu0 %v314_v0 }
  0x16   :  { %278 = vmatpush3.bf16.msra.mxu0 %v298_v6 }
  0x17   :  { %279 = vmatprep.subr.bf16.mxu0 %v314_v0 }
  0x1a   :  { %280 = vmatpush3.bf16.msra.mxu0 %v299_v7 }
  0x1b   :  { %281 = vmatprep.subr.bf16.mxu0 %v314_v0 }
  0x1e   :  { %282 = vmatpush3.bf16.msra.mxu0 %v300_v8 }
  0x21   :  { %284 = vmatmul.mubr.bf16.vlgmr.msra.gmra.mrb[0].mxu0 %v301_v9 }
  0xf4   :  { %v132_v14 = vpop.f32.mrb[0].mxu0 }
  0xf5   :  { %v145_v15 = vsel %vm144_vm2, %v132_v14, -1e+30  ;;  %v285_v16 = vpop.f32.mrb[1].mxu0 }
  0xf6   :  { %151 = vmax.xlane.f32.xlu0 %v145_v15  ;;  %v135_v17 = vpop.f32.mrb[2].mxu0 }
  0xf7   :  { %v286_v18 = vpop.f32.mrb[3].mxu0  ;;  %v146_v19 = vsel %vm144_vm2, %v135_v17, -1e+30 }
  0xfa   :  { %153 = vmax.xlane.f32.xlu0 %v146_v19 }
 0x110   :  { %197 = vperm.xlu0 %292, %v387_v20  }
 0x183   :  { %v152_v22 = vpop.xlane.xlu0 %151 }
 0x184   :  { %v155_v23 = vmax.f32 %v149_v21, %v152_v22 }
 0x186   :  { %v159_v25 = vsub.f32 %v149_v21, %v155_v23  ;;  %192 = vst.msk [vmem:[#allocation2] sm:$0xff] %vm19_vm1, %v155_v23  ;;  %169 = vperm.xlu1 %291, %v155_v23  }
 0x187   :  { %v154_v26 = vpop.xlane.xlu0 %153 }
 0x188   :  { %v156_v27 = vmax.f32 %v150_v24, %v154_v26  ;;  %v161_v45 = vmul.f32 1.442695, %v159_v25 }
 0x18a   :  { %v160_v28 = vsub.f32 %v150_v24, %v156_v27  ;;  %193 = vst.msk [vmem:[#allocation2 + $0x8] sm:$0xff] %vm19_vm1, %v156_v27  ;;  %174 = vperm.xlu1 %291, %v156_v27  }
 0x18c   :  { %v163_v46 = vmul.f32 1.442695, %v160_v28 }
 0x18d   :  { %v225_v1 = vld [vmem:[#allocation2] sm:$0xff] }
 0x18e   :  { %200 = vperm.xlu1 %291, %v395_v29  }
 0x18f   :  { %v198_v30 = vpop.permute.xlu0 %197 }
 0x190   :  { %vm202_vm3 = vcmp.eq.s32.totalorder %v141_v13, %v198_v30 }
 0x191   :  { %v204_v31 = vsel %vm202_vm3, %v145_v15, 0.0  ;;  %v226_v8 = vld [vmem:[#allocation2 + $0x8] sm:$0xff] }
 0x192   :  { %206 = vadd.xlane.f32.xlu0 %v204_v31 }
 0x205   :  { %v170_v32 = vpop.permute.xlu1 %169 }
 0x206   :  { %v177_v33 = vsub.f32 %v145_v15, %v170_v32 }
 0x208   :  { %v179_v34 = vmul.f32 1.442695, %v177_v33 }
 0x209   :  { %v175_v35 = vpop.permute.xlu1 %174 }
 0x20a   :  { %302 = vpow2.f32 %v179_v34  ;;  %v178_v36 = vsub.f32 %v146_v19, %v175_v35 }
 0x20c   :  { %v181_v37 = vmul.f32 1.442695, %v178_v36 }
 0x20d   :  { %v201_v39 = vpop.permute.xlu1 %200 }
 0x20e   :  { %304 = vpow2.f32 %v181_v37  ;;  %vm203_vm4 = vcmp.eq.s32.totalorder %v141_v13, %v201_v39 }
 0x20f   :  { %v205_v41 = vsel %vm203_vm4, %v146_v19, 0.0  ;;  %306 = vpow2.f32 %v161_v45 }
 0x210   :  { %308 = vpow2.f32 %v163_v46 }
 0x214   :  { %v303_v38 = vpop.eup %302 }
 0x215   :  { %183 = vadd.xlane.f32.xlu1 %v303_v38 }
 0x218   :  { %v305_v40 = vpop.eup %304 }
 0x219   :  { %185 = vadd.xlane.f32.xlu1 %v305_v40  ;;  %v307_v47 = vpop.eup %306 }
 0x21a   :  { %v165_v49 = vmul.f32 %v307_v47, %v157_v48  ;;  %v309_v50 = vpop.eup %308 }
 0x21b   :  { %v166_v54 = vmul.f32 %v309_v50, %v158_v52 }
 0x21d   :  { %208 = vadd.xlane.f32.xlu1 %v205_v41 }
 0x21f   :  { %v207_v43 = vpop.xlane.xlu0 %206 }
 0x220   :  { %v210_v44 = vadd.f32 %v207_v43, %v194_v42 }
 0x222   :  { %212 = vst.msk [vmem:[#allocation4] sm:$0xff] %vm19_vm1, %v210_v44 }
 0x229   :  { %v235_v5 = vld [vmem:[#allocation4] sm:$0xff] }
 0x2a2   :  { %v184_v51 = vpop.xlane.xlu1 %183 }
 0x2a3   :  { %v187_v53 = vadd.f32 %v184_v51, %v165_v49 }
 0x2a5   :  { %190 = vst.msk [vmem:[#allocation3] sm:$0xff] %vm19_vm1, %v187_v53 }
 0x2a6   :  { %v186_v55 = vpop.xlane.xlu1 %185 }
 0x2a7   :  { %v188_v56 = vadd.f32 %v186_v55, %v166_v54 }
 0x2a9   :  { %191 = vst.msk [vmem:[#allocation3 + $0x8] sm:$0xff] %vm19_vm1, %v188_v56 }
 0x2aa   :  { %v209_v58 = vpop.xlane.xlu1 %208 }
 0x2ab   :  { %v211_v59 = vadd.f32 %v209_v58, %v195_v57 }
 0x2ac   :  { %v227_v60 = vld [vmem:[#allocation3] sm:$0xff] }
 0x2ad   :  { %310 = vlog2.f32 %v227_v60  ;;  %213 = vst.msk [vmem:[#allocation4 + $0x8] sm:$0xff] %vm19_vm1, %v211_v59 }
 0x2b0   :  { %v228_v61 = vld [vmem:[#allocation3 + $0x8] sm:$0xff] }
 0x2b1   :  { %312 = vlog2.f32 %v228_v61 }
 0x2b4   :  { %v236_v12 = vld [vmem:[#allocation4 + $0x8] sm:$0xff] }
 0x2b7   :  { %v311_v62 = vpop.eup %310 }
 0x2b8   :  { %v230_v63 = vmul.f32 0.6931472, %v311_v62 }
 0x2ba   :  { %v233_v2 = vadd.f32 %v230_v63, %v225_v1 }
 0x2bb   :  { %v313_v3 = vpop.eup %312 }
 0x2bc   :  { %v237_v6 = vsub.f32 %v233_v2, %v235_v5  ;;  %v232_v7 = vmul.f32 0.6931472, %v313_v3 }
 0x2be   :  { %v239_v9 = vmul.f32 %v256_v4, %v237_v6  ;;  %v234_v10 = vadd.f32 %v232_v7, %v226_v8 }
 0x2c0   :  { %v238_v13 = vsub.f32 %v234_v10, %v236_v12  ;;  %241 = vst.msk [vmem:[%s417_s3] sm:$0xff] %vm19_vm1, %v239_v9 }
 0x2c2   :  { %v240_v14 = vmul.f32 %v257_v11, %v238_v13 }
 0x2c4   :  { %242 = vst.msk [vmem:[%s417_s3 + $0x8] sm:$0xff] %vm19_vm1, %v240_v14 }

</bundles_post_ra>
